<compile_context>
chip_gen: v5e
topology: v5e:2x2
jax: 0.10.0
libtpu: 0.0.40
codegen_flags: <defaults>
</compile_context>

<pallas_src>
import numpy as np

import jax
import jax.numpy as jnp
from jax.experimental import pallas as pl
from jax.experimental.pallas import tpu as pltpu


def _dft_matrices(L: int):
    """Real-valued rfft / irfft matrices (float32), built on host."""
    F_half = L // 2 + 1
    f = np.arange(F_half)[:, None]
    l = np.arange(L)[None, :]
    ang = 2.0 * np.pi * ((f * l) % L).astype(np.float64) / L            # (F, L)
    cos_f = np.cos(ang)
    sin_f = np.sin(ang)
    # forward:  Xr = cosF @ x ; Xi = sinF @ x         (x is (L, C))
    cosF = cos_f.astype(np.float32)                                      # (F, L)
    sinF = (-sin_f).astype(np.float32)                                   # (F, L)
    # inverse:  x = icos @ Xr + isin @ Xi
    w = np.full((F_half, 1), 2.0)
    w[0, 0] = 1.0
    if L % 2 == 0:
        w[-1, 0] = 1.0
    icos = (cos_f * w / L).T.astype(np.float32)                          # (L, F)
    isin = (-sin_f * w / L).T.astype(np.float32)                         # (L, F)
    return (jnp.asarray(cosF), jnp.asarray(sinF),
            jnp.asarray(icos), jnp.asarray(isin))


def fedformer_encoder_layer(seasonal, trend, weight, bias, gamma, beta,
                            *, top_k_freq: int = 16, eps: float = 1e-5):
    """Pallas implementation of FedformerEncoderLayer.forward."""
    B, L, C = seasonal.shape
    F_half = L // 2 + 1
    k = int(min(top_k_freq, F_half))

    cosF, sinF, icos, isin = _dft_matrices(L)
    w_t = jnp.asarray(weight, jnp.float32).T             # (C, C): x @ w_t == x @ W.T
    b2 = jnp.asarray(bias, jnp.float32).reshape(1, C)
    g2 = jnp.asarray(gamma, jnp.float32).reshape(1, C)
    bt2 = jnp.asarray(beta, jnp.float32).reshape(1, C)

    def kernel(x_ref, cf_ref, sf_ref, ic_ref, isn_ref,
               wt_ref, b_ref, gam_ref, bet_ref, out_ref):
        x = x_ref[...].astype(jnp.float32)                                   # (L, C)

        # --- FourierBlock: real DFT on the MXU -------------------------------
        xr = jnp.dot(cf_ref[...], x, preferred_element_type=jnp.float32)    # (F, C)
        xi = jnp.dot(sf_ref[...], x, preferred_element_type=jnp.float32)    # (F, C)
        mag2 = xr * xr + xi * xi                                             # (F, C)

        # rank[f, c] = #{g : mag2[g, c] > mag2[f, c]}; keep top-k per channel.
        rank = jnp.zeros_like(mag2)
        for gg in range(F_half):                      # F_half is static & small
            rank = rank + (mag2[gg:gg + 1, :] > mag2).astype(jnp.float32)
        keep = rank < float(k)
        xr_m = jnp.where(keep, xr, 0.0)
        xi_m = jnp.where(keep, xi, 0.0)

        fourier = (jnp.dot(ic_ref[...], xr_m, preferred_element_type=jnp.float32)
                   + jnp.dot(isn_ref[...], xi_m,
                             preferred_element_type=jnp.float32))            # (L, C)

        # --- Linear + (identity) dropout --------------------------------------
        lin = jnp.dot(fourier, wt_ref[...],
                      preferred_element_type=jnp.float32) + b_ref[...]
        # TODO(synk): nn.Dropout treated as identity (inference mode); training
        # dropout would need pltpu.prng_random_bits masking.

        # --- residual + LayerNorm over d_model ---------------------------------
        resid = x + lin
        mean = jnp.mean(resid, axis=-1, keepdims=True)
        cent = resid - mean
        var = jnp.mean(cent * cent, axis=-1, keepdims=True)
        y = cent * jax.lax.rsqrt(var + eps) * gam_ref[...] + bet_ref[...]
        out_ref[...] = y.astype(out_ref.dtype)

    out = pl.pallas_call(
        kernel,
        out_shape=jax.ShapeDtypeStruct((B, L, C), seasonal.dtype),
        grid_spec=pltpu.PrefetchScalarGridSpec(
            num_scalar_prefetch=0,
            grid=(B,),
            in_specs=[
                pl.BlockSpec((pl.Squeezed(), L, C), lambda b: (b, 0, 0)),   # seasonal
                pl.BlockSpec((F_half, L), lambda b: (0, 0)),                # cosF
                pl.BlockSpec((F_half, L), lambda b: (0, 0)),                # sinF
                pl.BlockSpec((L, F_half), lambda b: (0, 0)),                # icos
                pl.BlockSpec((L, F_half), lambda b: (0, 0)),                # isin
                pl.BlockSpec((C, C), lambda b: (0, 0)),                     # W^T
                pl.BlockSpec((1, C), lambda b: (0, 0)),                     # bias
                pl.BlockSpec((1, C), lambda b: (0, 0)),                     # gamma
                pl.BlockSpec((1, C), lambda b: (0, 0)),                     # beta
            ],
            out_specs=pl.BlockSpec((pl.Squeezed(), L, C), lambda b: (b, 0, 0)),
        ),
        compiler_params=pltpu.CompilerParams(
            dimension_semantics=("parallel",),
        ),
    )(seasonal, cosF, sinF, icos, isin, w_t, b2, g2, bt2)

    # trend is returned untouched, exactly as in the PyTorch module.
    return out, trend


def _reference(seasonal, trend, weight, bias, gamma, beta, top_k_freq, eps=1e-5):
    """Pure-JAX reference faithful to the PyTorch forward."""
    B, L, C = seasonal.shape
    fx = jnp.fft.rfft(seasonal.astype(jnp.float32), axis=1)        # (B, F, C) complex
    F_half = fx.shape[1]
    k = min(top_k_freq, F_half)
    mag = jnp.abs(fx)
    mag_t = jnp.transpose(mag, (0, 2, 1))                          # (B, C, F)
    _, idx = jax.lax.top_k(mag_t, k)                               # (B, C, k)
    mask_t = jnp.zeros(mag_t.shape, dtype=bool)
    mask_t = jax.vmap(jax.vmap(lambda m, i: m.at[i].set(True)))(mask_t, idx)
    mask = jnp.transpose(mask_t, (0, 2, 1))                        # (B, F, C)
    fx_f = jnp.where(mask, fx, jnp.zeros_like(fx))
    fourier = jnp.fft.irfft(fx_f, n=L, axis=1).astype(jnp.float32)
    lin = jnp.einsum("blc,dc->bld", fourier, weight,
                     precision=jax.lax.Precision.HIGHEST) + bias
    resid = seasonal + lin
    mean = resid.mean(-1, keepdims=True)
    var = ((resid - mean) ** 2).mean(-1, keepdims=True)
    out = (resid - mean) / jnp.sqrt(var + eps) * gamma + beta
    return out, trend


if __name__ == "__main__":
    key = jax.random.PRNGKey(0)
    B, L, d_model = 2, 16, 32
    top_k_freq = 4                      # < L//2+1 so the filter actually does work
    k1, k2, k3, k4 = jax.random.split(key, 4)

    seasonal = jax.random.normal(k1, (B, L, d_model), dtype=jnp.float32)
    trend = jax.random.normal(k2, (B, L, d_model), dtype=jnp.float32)
    bound = 1.0 / np.sqrt(d_model)
    weight = jax.random.uniform(k3, (d_model, d_model), jnp.float32, -bound, bound)
    bias = jax.random.uniform(k4, (d_model,), jnp.float32, -bound, bound)
    gamma = jnp.ones((d_model,), jnp.float32)
    beta = jnp.zeros((d_model,), jnp.float32)

    out, trend_out = fedformer_encoder_layer(
        seasonal, trend, weight, bias, gamma, beta, top_k_freq=top_k_freq)
    out, trend_out = jax.block_until_ready((out, trend_out))

    out_ref, trend_ref = _reference(
        seasonal, trend, weight, bias, gamma, beta, top_k_freq)

    assert out.shape == (B, L, d_model)
    max_diff = float(jnp.max(jnp.abs(out - out_ref)))
    assert jnp.allclose(out, out_ref, atol=5e-3, rtol=5e-3), f"max diff {max_diff}"
    assert jnp.allclose(trend_out, trend_ref)

    print("KERNEL_OK")
</pallas_src>

<mosaic_0001>
module attributes {stable_mosaic.version = 11 : i64} {
  func.func @kernel(%arg0: i32, %arg1: memref<1x16x32xf32, #tpu.memory_space<vmem>>, %arg2: memref<9x16xf32, #tpu.memory_space<vmem>>, %arg3: memref<9x16xf32, #tpu.memory_space<vmem>>, %arg4: memref<16x9xf32, #tpu.memory_space<vmem>>, %arg5: memref<16x9xf32, #tpu.memory_space<vmem>>, %arg6: memref<32x32xf32, #tpu.memory_space<vmem>>, %arg7: memref<1x32xf32, #tpu.memory_space<vmem>>, %arg8: memref<1x32xf32, #tpu.memory_space<vmem>>, %arg9: memref<1x32xf32, #tpu.memory_space<vmem>>, %arg10: memref<1x16x32xf32, #tpu.memory_space<vmem>>) attributes {dimension_semantics = [#tpu.dimension_semantics<parallel>], iteration_bounds = array<i64: 2>, scalar_prefetch = 0 : i64, scratch_operands = 0 : i64, tpu.core_type = #tpu.core_type<tc>, window_params = [{transform_indices = @transform_0, window_bounds = array<i64: 1, 16, 32>}, {pipeline_mode = #tpu.pipeline_mode<synchronous>, transform_indices = @transform_1, window_bounds = array<i64: 9, 16>}, {pipeline_mode = #tpu.pipeline_mode<synchronous>, transform_indices = @transform_2, window_bounds = array<i64: 9, 16>}, {pipeline_mode = #tpu.pipeline_mode<synchronous>, transform_indices = @transform_3, window_bounds = array<i64: 16, 9>}, {pipeline_mode = #tpu.pipeline_mode<synchronous>, transform_indices = @transform_4, window_bounds = array<i64: 16, 9>}, {pipeline_mode = #tpu.pipeline_mode<synchronous>, transform_indices = @transform_5, window_bounds = array<i64: 32, 32>}, {pipeline_mode = #tpu.pipeline_mode<synchronous>, transform_indices = @transform_6, window_bounds = array<i64: 1, 32>}, {pipeline_mode = #tpu.pipeline_mode<synchronous>, transform_indices = @transform_7, window_bounds = array<i64: 1, 32>}, {pipeline_mode = #tpu.pipeline_mode<synchronous>, transform_indices = @transform_8, window_bounds = array<i64: 1, 32>}, {transform_indices = @transform_9, window_bounds = array<i64: 1, 16, 32>}]} {
    %c0 = arith.constant 0 : index
    %c0_0 = arith.constant 0 : index
    %c0_1 = arith.constant 0 : index
    %0 = vector.load %arg1[%c0, %c0_0, %c0_1] : memref<1x16x32xf32, #tpu.memory_space<vmem>>, vector<1x16x32xf32>
    %1 = vector.shape_cast %0 : vector<1x16x32xf32> to vector<16x32xf32>
    %c0_2 = arith.constant 0 : index
    %c0_3 = arith.constant 0 : index
    %2 = vector.load %arg2[%c0_2, %c0_3] : memref<9x16xf32, #tpu.memory_space<vmem>>, vector<9x16xf32>
    %cst = arith.constant dense<0.000000e+00> : vector<9x32xf32>
    %3 = tpu.matmul %2, %1, %cst {dimension_numbers = #tpu.dot_dimension_numbers<[1], [0], [0], [1], [0, 0, 1, 1], [], []>} : vector<9x16xf32>, vector<16x32xf32>, vector<9x32xf32> -> vector<9x32xf32>
    %c0_4 = arith.constant 0 : index
    %c0_5 = arith.constant 0 : index
    %4 = vector.load %arg3[%c0_4, %c0_5] : memref<9x16xf32, #tpu.memory_space<vmem>>, vector<9x16xf32>
    %cst_6 = arith.constant dense<0.000000e+00> : vector<9x32xf32>
    %5 = tpu.matmul %4, %1, %cst_6 {dimension_numbers = #tpu.dot_dimension_numbers<[1], [0], [0], [1], [0, 0, 1, 1], [], []>} : vector<9x16xf32>, vector<16x32xf32>, vector<9x32xf32> -> vector<9x32xf32>
    %6 = arith.mulf %3, %3 : vector<9x32xf32>
    %7 = arith.mulf %5, %5 : vector<9x32xf32>
    %8 = arith.addf %6, %7 : vector<9x32xf32>
    %cst_7 = arith.constant 0.000000e+00 : f32
    %9 = vector.broadcast %cst_7 : f32 to vector<9x32xf32>
    %10 = vector.extract_strided_slice %8 {offsets = [0, 0], sizes = [1, 32], strides = [1, 1]} : vector<9x32xf32> to vector<1x32xf32>
    %11 = vector.broadcast %10 : vector<1x32xf32> to vector<9x32xf32>
    %12 = arith.cmpf ogt, %11, %8 : vector<9x32xf32>
    %13 = arith.extui %12 : vector<9x32xi1> to vector<9x32xi32>
    %14 = arith.sitofp %13 : vector<9x32xi32> to vector<9x32xf32>
    %15 = arith.addf %9, %14 : vector<9x32xf32>
    %16 = vector.extract_strided_slice %8 {offsets = [1, 0], sizes = [1, 32], strides = [1, 1]} : vector<9x32xf32> to vector<1x32xf32>
    %17 = vector.broadcast %16 : vector<1x32xf32> to vector<9x32xf32>
    %18 = arith.cmpf ogt, %17, %8 : vector<9x32xf32>
    %19 = arith.extui %18 : vector<9x32xi1> to vector<9x32xi32>
    %20 = arith.sitofp %19 : vector<9x32xi32> to vector<9x32xf32>
    %21 = arith.addf %15, %20 : vector<9x32xf32>
    %22 = vector.extract_strided_slice %8 {offsets = [2, 0], sizes = [1, 32], strides = [1, 1]} : vector<9x32xf32> to vector<1x32xf32>
    %23 = vector.broadcast %22 : vector<1x32xf32> to vector<9x32xf32>
    %24 = arith.cmpf ogt, %23, %8 : vector<9x32xf32>
    %25 = arith.extui %24 : vector<9x32xi1> to vector<9x32xi32>
    %26 = arith.sitofp %25 : vector<9x32xi32> to vector<9x32xf32>
    %27 = arith.addf %21, %26 : vector<9x32xf32>
    %28 = vector.extract_strided_slice %8 {offsets = [3, 0], sizes = [1, 32], strides = [1, 1]} : vector<9x32xf32> to vector<1x32xf32>
    %29 = vector.broadcast %28 : vector<1x32xf32> to vector<9x32xf32>
    %30 = arith.cmpf ogt, %29, %8 : vector<9x32xf32>
    %31 = arith.extui %30 : vector<9x32xi1> to vector<9x32xi32>
    %32 = arith.sitofp %31 : vector<9x32xi32> to vector<9x32xf32>
    %33 = arith.addf %27, %32 : vector<9x32xf32>
    %34 = vector.extract_strided_slice %8 {offsets = [4, 0], sizes = [1, 32], strides = [1, 1]} : vector<9x32xf32> to vector<1x32xf32>
    %35 = vector.broadcast %34 : vector<1x32xf32> to vector<9x32xf32>
    %36 = arith.cmpf ogt, %35, %8 : vector<9x32xf32>
    %37 = arith.extui %36 : vector<9x32xi1> to vector<9x32xi32>
    %38 = arith.sitofp %37 : vector<9x32xi32> to vector<9x32xf32>
    %39 = arith.addf %33, %38 : vector<9x32xf32>
    %40 = vector.extract_strided_slice %8 {offsets = [5, 0], sizes = [1, 32], strides = [1, 1]} : vector<9x32xf32> to vector<1x32xf32>
    %41 = vector.broadcast %40 : vector<1x32xf32> to vector<9x32xf32>
    %42 = arith.cmpf ogt, %41, %8 : vector<9x32xf32>
    %43 = arith.extui %42 : vector<9x32xi1> to vector<9x32xi32>
    %44 = arith.sitofp %43 : vector<9x32xi32> to vector<9x32xf32>
    %45 = arith.addf %39, %44 : vector<9x32xf32>
    %46 = vector.extract_strided_slice %8 {offsets = [6, 0], sizes = [1, 32], strides = [1, 1]} : vector<9x32xf32> to vector<1x32xf32>
    %47 = vector.broadcast %46 : vector<1x32xf32> to vector<9x32xf32>
    %48 = arith.cmpf ogt, %47, %8 : vector<9x32xf32>
    %49 = arith.extui %48 : vector<9x32xi1> to vector<9x32xi32>
    %50 = arith.sitofp %49 : vector<9x32xi32> to vector<9x32xf32>
    %51 = arith.addf %45, %50 : vector<9x32xf32>
    %52 = vector.extract_strided_slice %8 {offsets = [7, 0], sizes = [1, 32], strides = [1, 1]} : vector<9x32xf32> to vector<1x32xf32>
    %53 = vector.broadcast %52 : vector<1x32xf32> to vector<9x32xf32>
    %54 = arith.cmpf ogt, %53, %8 : vector<9x32xf32>
    %55 = arith.extui %54 : vector<9x32xi1> to vector<9x32xi32>
    %56 = arith.sitofp %55 : vector<9x32xi32> to vector<9x32xf32>
    %57 = arith.addf %51, %56 : vector<9x32xf32>
    %58 = vector.extract_strided_slice %8 {offsets = [8, 0], sizes = [1, 32], strides = [1, 1]} : vector<9x32xf32> to vector<1x32xf32>
    %59 = vector.broadcast %58 : vector<1x32xf32> to vector<9x32xf32>
    %60 = arith.cmpf ogt, %59, %8 : vector<9x32xf32>
    %61 = arith.extui %60 : vector<9x32xi1> to vector<9x32xi32>
    %62 = arith.sitofp %61 : vector<9x32xi32> to vector<9x32xf32>
    %63 = arith.addf %57, %62 : vector<9x32xf32>
    %cst_8 = arith.constant 4.000000e+00 : f32
    %64 = vector.broadcast %cst_8 : f32 to vector<9x32xf32>
    %65 = arith.cmpf olt, %63, %64 : vector<9x32xf32>
    %cst_9 = arith.constant 0.000000e+00 : f32
    %66 = vector.broadcast %cst_9 : f32 to vector<9x32xf32>
    %67 = arith.select %65, %3, %66 : vector<9x32xi1>, vector<9x32xf32>
    %cst_10 = arith.constant 0.000000e+00 : f32
    %68 = vector.broadcast %cst_10 : f32 to vector<9x32xf32>
    %69 = arith.select %65, %5, %68 : vector<9x32xi1>, vector<9x32xf32>
    %c0_11 = arith.constant 0 : index
    %c0_12 = arith.constant 0 : index
    %70 = vector.load %arg4[%c0_11, %c0_12] : memref<16x9xf32, #tpu.memory_space<vmem>>, vector<16x9xf32>
    %cst_13 = arith.constant dense<0.000000e+00> : vector<16x32xf32>
    %71 = tpu.matmul %70, %67, %cst_13 {dimension_numbers = #tpu.dot_dimension_numbers<[1], [0], [0], [1], [0, 0, 1, 1], [], []>} : vector<16x9xf32>, vector<9x32xf32>, vector<16x32xf32> -> vector<16x32xf32>
    %c0_14 = arith.constant 0 : index
    %c0_15 = arith.constant 0 : index
    %72 = vector.load %arg5[%c0_14, %c0_15] : memref<16x9xf32, #tpu.memory_space<vmem>>, vector<16x9xf32>
    %cst_16 = arith.constant dense<0.000000e+00> : vector<16x32xf32>
    %73 = tpu.matmul %72, %69, %cst_16 {dimension_numbers = #tpu.dot_dimension_numbers<[1], [0], [0], [1], [0, 0, 1, 1], [], []>} : vector<16x9xf32>, vector<9x32xf32>, vector<16x32xf32> -> vector<16x32xf32>
    %74 = arith.addf %71, %73 : vector<16x32xf32>
    %c0_17 = arith.constant 0 : index
    %c0_18 = arith.constant 0 : index
    %75 = vector.load %arg6[%c0_17, %c0_18] : memref<32x32xf32, #tpu.memory_space<vmem>>, vector<32x32xf32>
    %cst_19 = arith.constant dense<0.000000e+00> : vector<16x32xf32>
    %76 = tpu.matmul %74, %75, %cst_19 {dimension_numbers = #tpu.dot_dimension_numbers<[1], [0], [0], [1], [0, 0, 1, 1], [], []>} : vector<16x32xf32>, vector<32x32xf32>, vector<16x32xf32> -> vector<16x32xf32>
    %c0_20 = arith.constant 0 : index
    %c0_21 = arith.constant 0 : index
    %77 = vector.load %arg7[%c0_20, %c0_21] : memref<1x32xf32, #tpu.memory_space<vmem>>, vector<1x32xf32>
    %78 = vector.broadcast %77 : vector<1x32xf32> to vector<16x32xf32>
    %79 = arith.addf %76, %78 : vector<16x32xf32>
    %80 = arith.addf %1, %79 : vector<16x32xf32>
    %cst_22 = arith.constant dense<0.000000e+00> : vector<16xf32>
    %81 = vector.multi_reduction <add>, %80, %cst_22 [1] : vector<16x32xf32> to vector<16xf32>
    %82 = vector.shape_cast %81 : vector<16xf32> to vector<16x1xf32>
    %cst_23 = arith.constant 3.200000e+01 : f32
    %83 = vector.broadcast %cst_23 : f32 to vector<16x1xf32>
    %84 = arith.divf %82, %83 : vector<16x1xf32>
    %85 = vector.broadcast %84 : vector<16x1xf32> to vector<16x32xf32>
    %86 = arith.subf %80, %85 : vector<16x32xf32>
    %87 = arith.mulf %86, %86 : vector<16x32xf32>
    %cst_24 = arith.constant dense<0.000000e+00> : vector<16xf32>
    %88 = vector.multi_reduction <add>, %87, %cst_24 [1] : vector<16x32xf32> to vector<16xf32>
    %89 = vector.shape_cast %88 : vector<16xf32> to vector<16x1xf32>
    %cst_25 = arith.constant 3.200000e+01 : f32
    %90 = vector.broadcast %cst_25 : f32 to vector<16x1xf32>
    %91 = arith.divf %89, %90 : vector<16x1xf32>
    %cst_26 = arith.constant 9.99999974E-6 : f32
    %92 = vector.broadcast %cst_26 : f32 to vector<16x1xf32>
    %93 = arith.addf %91, %92 : vector<16x1xf32>
    %94 = math.rsqrt %93 : vector<16x1xf32>
    %95 = vector.broadcast %94 : vector<16x1xf32> to vector<16x32xf32>
    %96 = arith.mulf %86, %95 : vector<16x32xf32>
    %c0_27 = arith.constant 0 : index
    %c0_28 = arith.constant 0 : index
    %97 = vector.load %arg8[%c0_27, %c0_28] : memref<1x32xf32, #tpu.memory_space<vmem>>, vector<1x32xf32>
    %98 = vector.broadcast %97 : vector<1x32xf32> to vector<16x32xf32>
    %99 = arith.mulf %96, %98 : vector<16x32xf32>
    %c0_29 = arith.constant 0 : index
    %c0_30 = arith.constant 0 : index
    %100 = vector.load %arg9[%c0_29, %c0_30] : memref<1x32xf32, #tpu.memory_space<vmem>>, vector<1x32xf32>
    %101 = vector.broadcast %100 : vector<1x32xf32> to vector<16x32xf32>
    %102 = arith.addf %99, %101 : vector<16x32xf32>
    %c0_31 = arith.constant 0 : index
    %c0_32 = arith.constant 0 : index
    %c0_33 = arith.constant 0 : index
    %103 = vector.load %arg10[%c0_31, %c0_32, %c0_33] : memref<1x16x32xf32, #tpu.memory_space<vmem>>, vector<1x16x32xf32>
    %104 = vector.shape_cast %103 : vector<1x16x32xf32> to vector<16x32xf32>
    %105 = vector.shape_cast %102 : vector<16x32xf32> to vector<1x16x32xf32>
    tpu.vector_store %arg10[%c0_31, %c0_32, %c0_33], %105 {strides = array<i32>} : memref<1x16x32xf32, #tpu.memory_space<vmem>>, vector<1x16x32xf32>,
    return
  }
  func.func @transform_0(%arg0: i32) -> (i32, i32, i32) {
    %c0_i32 = arith.constant 0 : i32
    %c0_i32_0 = arith.constant 0 : i32
    %c0_i32_1 = arith.constant 0 : i32
    return %arg0, %c0_i32, %c0_i32_0 : i32, i32, i32
  }
  func.func @transform_1(%arg0: i32) -> (i32, i32) {
    %c0_i32 = arith.constant 0 : i32
    %c0_i32_0 = arith.constant 0 : i32
    %c0_i32_1 = arith.constant 0 : i32
    return %c0_i32, %c0_i32_0 : i32, i32
  }
  func.func @transform_2(%arg0: i32) -> (i32, i32) {
    %c0_i32 = arith.constant 0 : i32
    %c0_i32_0 = arith.constant 0 : i32
    %c0_i32_1 = arith.constant 0 : i32
    return %c0_i32, %c0_i32_0 : i32, i32
  }
  func.func @transform_3(%arg0: i32) -> (i32, i32) {
    %c0_i32 = arith.constant 0 : i32
    %c0_i32_0 = arith.constant 0 : i32
    %c0_i32_1 = arith.constant 0 : i32
    return %c0_i32, %c0_i32_0 : i32, i32
  }
  func.func @transform_4(%arg0: i32) -> (i32, i32) {
    %c0_i32 = arith.constant 0 : i32
    %c0_i32_0 = arith.constant 0 : i32
    %c0_i32_1 = arith.constant 0 : i32
    return %c0_i32, %c0_i32_0 : i32, i32
  }
  func.func @transform_5(%arg0: i32) -> (i32, i32) {
    %c0_i32 = arith.constant 0 : i32
    %c0_i32_0 = arith.constant 0 : i32
    %c0_i32_1 = arith.constant 0 : i32
    return %c0_i32, %c0_i32_0 : i32, i32
  }
  func.func @transform_6(%arg0: i32) -> (i32, i32) {
    %c0_i32 = arith.constant 0 : i32
    %c0_i32_0 = arith.constant 0 : i32
    %c0_i32_1 = arith.constant 0 : i32
    return %c0_i32, %c0_i32_0 : i32, i32
  }
  func.func @transform_7(%arg0: i32) -> (i32, i32) {
    %c0_i32 = arith.constant 0 : i32
    %c0_i32_0 = arith.constant 0 : i32
    %c0_i32_1 = arith.constant 0 : i32
    return %c0_i32, %c0_i32_0 : i32, i32
  }
  func.func @transform_8(%arg0: i32) -> (i32, i32) {
    %c0_i32 = arith.constant 0 : i32
    %c0_i32_0 = arith.constant 0 : i32
    %c0_i32_1 = arith.constant 0 : i32
    return %c0_i32, %c0_i32_0 : i32, i32
  }
  func.func @transform_9(%arg0: i32) -> (i32, i32, i32) {
    %c0_i32 = arith.constant 0 : i32
    %c0_i32_0 = arith.constant 0 : i32
    %c0_i32_1 = arith.constant 0 : i32
    return %arg0, %c0_i32, %c0_i32_0 : i32, i32, i32
  }
}

</mosaic_0001>

<bundles_post_ra>
// kernel: tpu_custom_call.1
= control target key start
LH: loop header
LB: loop body
LE: loop exit
PB: predicated region body
PF: predicated region fallthrough
CT: control target
= control target key end

     0   :  { %s1683_s0 = inlined_call_operand.hbm [shape: f32[2,16,32], index: 0, kind: input, shape index: {}]   ;;  %s1684_s1 = inlined_call_operand.hbm [shape: f32[9,16], index: 1, kind: input, shape index: {}]   ;;  %s1685_s2 = inlined_call_operand.hbm [shape: f32[9,16], index: 2, kind: input, shape index: {}]   ;;  %s1686_s3 = inlined_call_operand.hbm [shape: f32[16,9], index: 3, kind: input, shape index: {}]   ;;  %s1687_s4 = inlined_call_operand.hbm [shape: f32[16,9], index: 4, kind: input, shape index: {}]   ;;  %s1688_s5 = inlined_call_operand.hbm [shape: f32[32,32], index: 5, kind: input, shape index: {}]   ;;  %s1689_s6 = inlined_call_operand.vmem [shape: f32[1,32], index: 6, kind: input, shape index: {}]   ;;  %s1690_s7 = inlined_call_operand.vmem [shape: f32[1,32], index: 7, kind: input, shape index: {}]   ;;  %s1691_s8 = inlined_call_operand.vmem [shape: f32[1,32], index: 8, kind: input, shape index: {}]   ;;  %s1692_s9 = inlined_call_operand.hbm [shape: f32[2,16,32], index: 9, kind: output, shape index: {}]  }
   0x1   :  { %1695 = sst [smem:[#allocation19_spill]] %s1684_s1 }
   0x2   :  { %1696 = sst [smem:[#allocation20_spill]] %s1685_s2 }
   0x3   :  { %1697 = sst [smem:[#allocation21_spill]] %s1686_s3 }
   0x4   :  { %14 = vsyncpa [#allocation3], 0 }
   0x5   :  { %16 = vsyncpa [#allocation3 + $0x1], 0 }
   0x6   :  { %17 = vsyncpa [#allocation6], 0 }
   0x7   :  { %18 = vsyncpa [#allocation9], 0 }
   0x8   :  { %19 = vsyncpa [#allocation12], 0 }
   0x9   :  { %20 = vsyncpa [#allocation4], 0 }
   0xa   :  { %22 = vsyncpa [#allocation4 + $0x1], 0  ;;  %s1399_s30 = smov 0   ;;  %s1401_s10 = smov 0  }
   0xb   :  { %s1403_s11 = smov 0   ;;  %s1405_s12 = smov 0  }
   0xc LB: > { %s1698_s1 = sld [smem:[#allocation19_spill]]  ;;  %s1423_s16 = sadd.s32 4294967295, %s1336_s12   ;;  %s1336_s12 = sphi %s1405_s12, %s1715_s12   ;;  %s1332_s11 = sphi %s1403_s11, %s1714_s11   ;;  %s1328_s10 = sphi %s1401_s10, %s1713_s10   ;;  %s1324_s30 = sphi %s1399_s30, %s1712_s30  }
   0xd   : > { %p907_p0 = scmp.ge.s32.totalorder %s1336_s12, 1  ;;  %p49_p1 = scmp.eq.s32.totalorder %s1423_s16, 0 }
   0xe   : > { %p253_p2 = scmp.lt.s32.totalorder %s1336_s12, 3  ;;  %s1338_s18 = smov [#allocation5]  }
   0xf   : > { %s266_s19 = sshll.u32 %s1338_s18, 4  ;;  %s1700_s3 = sld [smem:[#allocation21_spill]]  ;;  %s267_s19 = int_to_ptr.vmem [resolvable:$true] %s266_s19 }
  0x10   : > { %p1428_p3 = pnand %p907_p0, %p253_p2  ;;  %s1702_s2 = sld [smem:[#allocation20_spill]] }
  0x11   : > { %s1339_s27 = smov [#allocation8]   ;;  %s1693_s29 = smov 128  }
  0x12   : > { %s264_s15 = sshll.u32 %s1698_s1, 4  ;;  %p990_p4 = pneg %p1428_p3  ;;  %s265_s15 = int_to_ptr.hbm [resolvable:$true] %s264_s15 }
  0x13   : > { %s294_s28 = sshll.u32 %s1339_s27, 4  ;;  %s1694_s13 = smov 8   ;;  %s295_s28 = int_to_ptr.vmem [resolvable:$true] %s294_s28 }
  0x14   : > { %p1440_p6 = pnand %p990_p4, %p49_p1  ;;  %s306_s20 = sshll.u32 %s1687_s4, 4  ;;  %s307_s20 = int_to_ptr.hbm [resolvable:$true] %s306_s20 }
  0x15   : > { %s292_s22 = sshll.u32 %s1700_s3, 4  ;;  %s1342_s21 = smov [#allocation7]   ;;  %s293_s22 = int_to_ptr.hbm [resolvable:$true] %s292_s22 }
  0x16   : > { %s278_s26 = sshll.u32 %s1702_s2, 4  ;;  %s280_s24 = sshll.u32 %s1342_s21, 4  ;;  %s279_s26 = int_to_ptr.hbm [resolvable:$true] %s278_s26  ;;  %s281_s24 = int_to_ptr.vmem [resolvable:$true] %s280_s24 }
  0x17   : > { %993 = dma.hbm_to_vmem [thread:$0]  (!%p1440_p6), %s265_s15, 256, %s267_s19, [#allocation6], %s1693_s29, %s1693_s29, %s1694_s13  }
  0x18   : > { %999 = dma.hbm_to_vmem [thread:$0]  (!%p1440_p6), %s293_s22, 256, %s295_s28, [#allocation9], %s1693_s29, %s1693_s29, %s1694_s13  }
  0x19   : > { %996 = dma.hbm_to_vmem [thread:$0]  (!%p1440_p6), %s279_s26, 256, %s281_s24, [#allocation6], %s1693_s29, %s1693_s29, %s1694_s13  }
  0x1a   : > { %s1343_s15 = smov [#allocation10]   ;;  %s320_s27 = sshll.u32 %s1688_s5, 4  ;;  %s321_s27 = int_to_ptr.hbm [resolvable:$true] %s320_s27 }
  0x1b   : > { %s308_s19 = sshll.u32 %s1343_s15, 4  ;;  %s1344_s26 = smov [#allocation11]   ;;  %s309_s19 = int_to_ptr.vmem [resolvable:$true] %s308_s19 }
  0x1c   : > { %1002 = dma.hbm_to_vmem [thread:$0]  (!%p1440_p6), %s307_s20, 256, %s309_s19, [#allocation9], %s1693_s29, %s1693_s29, %s1694_s13  }
  0x1d   : > { %s322_s28 = sshll.u32 %s1344_s26, 4  ;;  %s906_s14 = sadd.s32 4294967294, %s1336_s12   ;;  %s323_s28 = int_to_ptr.vmem [resolvable:$true] %s322_s28 }
  0x1e   : > { %1005 = dma.hbm_to_vmem [thread:$0]  (!%p1440_p6), %s321_s27, 512, %s323_s28, [#allocation12], %s1693_s29, %s1693_s29, %s1694_s13  }
  0x1f   : > { %s1480_s18 = sadd.s32 1, %s1336_s12   ;;  %s35_s21 = sadd.s32 1, %s1332_s11 }
  0x20   : > { %s32_s24 = ssub.s32 %s1336_s12, %s1480_s18  ;;  %p42_p7 = scmp.ne.s32.totalorder %s1332_s11, %s1328_s10 }
  0x21   : > { %p33_p8 = scmp.eq.s32.totalorder %s32_s24, 0  ;;  %p43_p9 = scmp.eq.s32.totalorder %s1336_s12, 0 }
  0x22   : > { %p48_p10 = scmp.ne.s32.totalorder %s1328_s10, %s1324_s30  ;;  %p240_p11 = scmp.eq.s32.totalorder %s1423_s16, 1 }
  0x23   : > { %s1492_s20 = scalar_select %p33_p8, %s1332_s11, %s35_s21  }
  0x24   : > { %p1496_p12 = por %p49_p1, %p48_p10  ;;  %p1500_p13 = por %p240_p11, %p42_p7 }
  0x25   : > { %p246_p0 = scmp.eq.s32.totalorder %s906_s14, 1  ;;  %p44_p2 = por %p43_p9, %p42_p7 }
  0x26   : > { %s345_s19 = sand.u32 1, %s1332_s11   ;;  %p1019_p6 = scmp.lt.s32.totalorder %s1336_s12, 2 }
  0x27   : > { %p1505_p4 = por %p246_p0, %p48_p10  ;;  %s914_s25 = sshll.u32 %s345_s19, 4 }
  0x28   : > { %s962_s27 = sshll.u32 %s1336_s12, 4  ;;  %s349_s29 = scalar_lea.vmem [#allocation2], %s914_s25 }
  0x29   : > { %s354_s21 = scalar_lea.hbm %s1683_s0, %s962_s27  ;;  %s357_s13 = sshll.u32 %s349_s29, 4  ;;  %s358_s13 = int_to_ptr.vmem [resolvable:$true] %s357_s13 }
  0x2a   : > { %s355_s24 = sshll.u32 %s354_s21, 4  ;;  %p1514_p8 = pnand %p1019_p6, %p44_p2  ;;  %s356_s24 = int_to_ptr.hbm [resolvable:$true] %s355_s24 }
  0x2b   : > { %s346_s1 = scalar_lea.sflag [#allocation3], %s345_s19  ;;  %s1228_s2 = sshra.s32 %s356_s24, 4  ;;  %s1229_s2 = int_to_ptr.hbm [resolvable:$true] %s1228_s2 }
  0x2c   : > { %s1230_s3 = scalar_lea.hbm %s1229_s2, 16  ;;  %p1232_p9 = pneg %p1514_p8 }
  0x2d   : > { %p1231_p7 = scmp.ne.s32.totalorder %s1229_s2, %s1230_s3  ;;  %s1235_s29 = scalar_lea.hbm %s1683_s0, 32 }
  0x2e   : > { %p1236_p0 = scmp.lt.s32.totalorder %s1229_s2, %s1683_s0  ;;  %p1237_p2 = scmp.lt.s32.totalorder %s1235_s29, %s1230_s3 }
  0x2f   : > { %p1233_p10 = pnand %p1232_p9, %p1231_p7 }
  0x30   : > { %p1238_p6 = por %p1237_p2, %p1236_p0 }
  0x31   : > { %p1234_p11 = pneg %p1233_p10 }
  0x33   : > { %p1239_p5 = pnand %p1238_p6, %p1234_p11 }
  0x35   : > { %1242 = shalt.err (!%p1239_p5)
}
  0x36   : > { %s1707_s19 = smov 8   ;;  %s1708_s21 = smov 128  }
  0x37   : > { %1009 = dma.hbm_to_vmem [thread:$0]  (!%p1514_p8), %s356_s24, 256, %s358_s13, %s346_s1, %s1708_s21, %s1708_s21, %s1707_s19  }
  0x38   : > { %369 = sbr.rel (%p1428_p3) target bundleno = 785 (0x311), region = 56  ;;  %s1534_s27 = sand.u32 (!%p1428_p3), 1, %s1328_s10  }
  0x39   : > { %s918_s2 = sshll.u32 (!%p1428_p3), %s1534_s27, 4  ;;  %s372_s3 = scalar_lea.sflag (!%p1428_p3), [#allocation3], %s1534_s27 }
  0x3a   : > { %s375_s26 = scalar_lea.vmem (!%p1428_p3), [#allocation2], %s918_s2 }
  0x3d   : > { %1303 = dma.done.wait (%p1496_p12), %s372_s3, 256  }
  0x3e   : > { %1305 = vsyncadd (%p1496_p12), %s372_s3, 4294967040 }
  0x3f   : > { %1307 = dma.done.wait (%p49_p1), [#allocation6], 512  }
  0x40   : > { %1309 = vsyncadd (%p49_p1), [#allocation6], 4294966784 }
  0x41   : > { %1311 = dma.done.wait (%p49_p1), [#allocation9], 512  }
  0x42   : > { %1313 = vsyncadd (%p49_p1), [#allocation9], 4294966784 }
  0x43   : > { %1315 = dma.done.wait (%p49_p1), [#allocation12], 512  }
  0x44   : > { %1317 = vsyncadd (%p49_p1), [#allocation12], 4294966784  ;;  %v1556_v0 = vld [vmem:[%s375_s26 + $0x8] sm:$0xff]  ;;  %v1558_v1 = vld [vmem:[%s375_s26] sm:$0xff]  ;;  %vm440_vm0 = vcmask 130048   ;;  %v1345_v17 = vmov 0.0  }
  0x45   : > { %964 = vmatpush.msra.mxu1 %v1556_v0  ;;  %v439_v2 = vld [vmem:[#allocation5 + $0x8] sm:$0x1]  ;;  %461 = vmatpush.msra.mxu0 %v1556_v0  ;;  %v438_v3 = vld [vmem:[#allocation5] sm:$0xff]  ;;  %v470_v4 = vld [vmem:[#allocation7] sm:$0xff]  ;;  %s963_s29 = sshll.u32 %s1423_s16, 4  ;;  %s435_s21 = scalar_lea.vmem [#allocation13], %s918_s2 }
  0x46   : > { %v471_v5 = vld [vmem:[#allocation7 + $0x8] sm:$0x1]  ;;  %v666_v29 = vld [vmem:[#allocation11 + $0x10] sm:$0xff]  ;;  %v665_v33 = vld [vmem:[#allocation11 + $0x8] sm:$0xff]  ;;  %s781_s19 = scalar_lea.hbm %s1692_s9, %s963_s29  ;;  %s782_s3 = sshll.u32 %s435_s21, 4  ;;  %s783_s3 = int_to_ptr.vmem [resolvable:$true] %s782_s3 }
  0x47   : > { %965 = vmatpush.msra.mxu1 %v1558_v1  ;;  %462 = vmatpush.msra.mxu0 %v1558_v1  ;;  %v667_v28 = vld [vmem:[#allocation11 + $0x18] sm:$0xff]  ;;  %s784_s16 = sshll.u32 %s781_s19, 4  ;;  %s770_s26 = scalar_lea.sflag [#allocation4], %s1534_s27  ;;  %s785_s16 = int_to_ptr.hbm [resolvable:$true] %s784_s16 }
  0x48   : > { %926 = vmatmul.msk.f32.vlgmr.msra.gmra.mxu1 %vm440_vm0, %v439_v2  ;;  %925 = vmatmul.msk.f32.vlgmr.msra.gmra.mxu0 %vm440_vm0, %v438_v3  ;;  %s1272_s1 = sshra.s32 %s785_s16, 4  ;;  %s1278_s23 = scalar_lea.hbm %s1692_s9, 32  ;;  %s1273_s1 = int_to_ptr.hbm [resolvable:$true] %s1272_s1 }
  0x49   : > { %492 = vmatpush.msrb.mxu1 %v1556_v0  ;;  %691 = vmatpush.msrb.mxu0 %v667_v28  ;;  %s1274_s17 = scalar_lea.hbm %s1273_s1, 16  ;;  %p1279_p12 = scmp.lt.s32.totalorder %s1273_s1, %s1692_s9 }
  0x4a   : > { %p1275_p1 = scmp.ne.s32.totalorder %s1273_s1, %s1274_s17  ;;  %p1280_p8 = scmp.lt.s32.totalorder %s1278_s23, %s1274_s17 }
  0x4b   : > { %493 = vmatpush.msrb.mxu1 %v1558_v1  ;;  %692 = vmatpush.msrb.mxu0 %v666_v29 }
  0x4c   : > { %p1276_p3 = pnand %p1275_p1, %p1500_p13  ;;  %p1281_p7 = por %p1280_p8, %p1279_p12 }
  0x4d   : > { %693 = vmatpush.msrb.mxu0 %v665_v33 }
  0x4e   : > { %p1277_p5 = pneg %p1276_p3 }
  0x50   : > { %927 = vmatmul.msk.f32.vlgmr.msrb.gmra.mxu1 %vm440_vm0, %v470_v4  ;;  %v596_v4 = vld [vmem:[#allocation10] sm:$0xff]  ;;  %p1282_p9 = pnand %p1281_p7, %p1277_p5 }
  0x58   : > { %928 = vmatmul.msk.f32.gmra.mxu1 %vm440_vm0, %v471_v5  ;;  %v594_v5 = vld [vmem:[#allocation8] sm:$0xff] }
  0xc5   : > { %v1566_v6 = vpop.f32.mrf.mxu1  ;;  %v1568_v7 = vpop.f32.mrf.mxu0 }
  0xc6   : > { %v501_v8 = vmul.f32 %v1568_v7, %v1568_v7  ;;  %v502_v20 = vmul.f32 %v1566_v6, %v1566_v6 }
  0xcd   : > { %v1572_v9 = vpop.f32.mrf.mxu1 }
  0xce   : > { %v503_v10 = vmul.f32 %v1572_v9, %v1572_v9 }
  0xd0   : > { %v1576_v11 = vadd.f32 %v503_v10, %v501_v8  ;;  %v597_v8 = vld [vmem:[#allocation10 + $0x8] sm:$0xff]  ;;  %v595_v10 = vld [vmem:[#allocation8 + $0x8] sm:$0xff] }
  0xd2   : > { %v507_v12 = vperm.slane %v1576_v11, 0  ;;  %v516_v13 = vperm.slane %v1576_v11, 1  ;;  %v525_v14 = vperm.slane %v1576_v11, 2  ;;  %v534_v16 = vperm.slane %v1576_v11, 3 }
  0xd3   : > { %v543_v24 = vperm.slane %v1576_v11, 4  ;;  %v552_v25 = vperm.slane %v1576_v11, 5  ;;  %v561_v35 = vperm.slane %v1576_v11, 6  ;;  %v570_v41 = vperm.slane %v1576_v11, 7 }
  0xd4   : > { %vm508_vm1 = vcmp.gt.f32.partialorder %v507_v12, %v1576_v11  ;;  %vm517_vm2 = vcmp.gt.f32.partialorder %v516_v13, %v1576_v11  ;;  %vm526_vm3 = vcmp.gt.f32.partialorder %v525_v14, %v1576_v11  ;;  %vm1597_vm4 = vcmp.gt.f32.partialorder %v534_v16, %v1576_v11 }
  0xd5   : > { %v1583_v15 = vpop.f32.mrf.mxu1  ;;  %v929_v18 = vsel %vm508_vm1, 1.0, %v1345_v17  ;;  %v931_v19 = vsel %vm517_vm2, 1.0, %v1345_v17  ;;  %v933_v26 = vsel %vm526_vm3, 1.0, %v1345_v17  ;;  %vm544_vm9 = vcmp.gt.f32.partialorder %v543_v24, %v1576_v11 }
  0xd6   : > { %v504_v21 = vmul.f32 %v1583_v15, %v1583_v15  ;;  %v523_v22 = vadd.f32 %v931_v19, %v929_v18  ;;  %v935_v37 = vsel %vm1597_vm4, 1.0, %v1345_v17  ;;  %vm553_vm11 = vcmp.gt.f32.partialorder %v552_v25, %v1576_v11 }
  0xd7   : > { %v937_v42 = vsel %vm544_vm9, 1.0, %v1345_v17  ;;  %vm562_vm13 = vcmp.gt.f32.partialorder %v561_v35, %v1576_v11  ;;  %v939_v46 = vsel %vm553_vm11, 1.0, %v1345_v17  ;;  %vm571_vm15 = vcmp.gt.f32.partialorder %v570_v41, %v1576_v11 }
  0xd8   : > { %v506_v23 = vadd.f32 %v504_v21, %v502_v20  ;;  %v532_v30 = vadd.f32 %v933_v26, %v523_v22  ;;  %v941_v51 = vsel %vm562_vm13, 1.0, %v1345_v17  ;;  %v943_v56 = vsel %vm571_vm15, 1.0, %v1345_v17 }
  0xd9   : > { %vm605_vm3 = vcmask 1040384  }
  0xda   : > { %vm509_vm5 = vcmp.gt.f32.partialorder %v507_v12, %v506_v23  ;;  %vm518_vm6 = vcmp.gt.f32.partialorder %v516_v13, %v506_v23  ;;  %vm527_vm7 = vcmp.gt.f32.partialorder %v525_v14, %v506_v23  ;;  %vm536_vm8 = vcmp.gt.f32.partialorder %v534_v16, %v506_v23 }
  0xdb   : > { %v930_v31 = vsel %vm509_vm5, 1.0, %v1345_v17  ;;  %v932_v32 = vsel %vm518_vm6, 1.0, %v1345_v17  ;;  %v934_v36 = vsel %vm527_vm7, 1.0, %v1345_v17  ;;  %vm545_vm10 = vcmp.gt.f32.partialorder %v543_v24, %v506_v23 }
  0xdc   : > { %v524_v34 = vadd.f32 %v932_v32, %v930_v31  ;;  %v541_v39 = vadd.f32 %v935_v37, %v532_v30  ;;  %v936_v40 = vsel %vm536_vm8, 1.0, %v1345_v17  ;;  %vm554_vm12 = vcmp.gt.f32.partialorder %v552_v25, %v506_v23 }
  0xdd   : > { %v938_v45 = vsel %vm545_vm10, 1.0, %v1345_v17  ;;  %vm563_vm14 = vcmp.gt.f32.partialorder %v561_v35, %v506_v23  ;;  %v579_v48 = vperm.slane %v506_v23, 0  ;;  %v940_v50 = vsel %vm554_vm12, 1.0, %v1345_v17 }
  0xde   : > { %v533_v38 = vadd.f32 %v934_v36, %v524_v34  ;;  %v550_v44 = vadd.f32 %v937_v42, %v541_v39  ;;  %vm572_vm0 = vcmp.gt.f32.partialorder %v570_v41, %v506_v23  ;;  %v942_v54 = vsel %vm563_vm14, 1.0, %v1345_v17 }
  0xdf   : > { %vm581_vm1 = vcmp.gt.f32.partialorder %v579_v48, %v506_v23  ;;  %v944_v57 = vsel %vm572_vm0, 1.0, %v1345_v17  ;;  %vm580_vm2 = vcmp.gt.f32.partialorder %v579_v48, %v1576_v11  ;;  %vm598_vm5 = vcmask 72704   ;;  %v664_v11 = vld [vmem:[#allocation11] sm:$0xff] }
  0xe0   : > { %v542_v43 = vadd.f32 %v936_v40, %v533_v38  ;;  %v559_v49 = vadd.f32 %v939_v46, %v550_v44  ;;  %v946_v60 = vsel %vm581_vm1, 1.0, %v1345_v17  ;;  %v945_v62 = vsel %vm580_vm2, 1.0, %v1345_v17  ;;  %694 = vmatpush.msrb.mxu0 %v664_v11 }
  0xe1   : > { %vm672_vm7 = vcmask 261120   ;;  %v1346_v24 = vmov 32.0  }
  0xe2   : > { %v551_v47 = vadd.f32 %v938_v45, %v542_v43  ;;  %v568_v53 = vadd.f32 %v941_v51, %v559_v49  ;;  %1072 = vrcp.f32 %v1346_v24 }
  0xe4   : > { %v560_v52 = vadd.f32 %v940_v50, %v551_v47  ;;  %v577_v58 = vadd.f32 %v943_v56, %v568_v53  ;;  %v1070_v53 = vld [vmem:[%s1690_s7] ss:$0 sm:$0xff] }
  0xe5   : > { %v1071_v56 = vld [vmem:[%s1691_s8] ss:$0 sm:$0xff] }
  0xe6   : > { %v569_v55 = vadd.f32 %v942_v54, %v560_v52  ;;  %v586_v63 = vadd.f32 %v945_v62, %v577_v58 }
  0xe8   : > { %v578_v59 = vadd.f32 %v944_v57, %v569_v55  ;;  %vm588_vm6 = vcmp.lt.f32.partialorder %v586_v63, 4.0  ;;  %v1073_v25 = vpop.eup %1072 }
  0xe9   : > { %v711_v26 = vmul.f32 32.0, %v1073_v25  ;;  %vm715_vm8 = vweird.f32 %v1073_v25 }
  0xea   : > { %v587_v61 = vadd.f32 %v946_v60, %v578_v59 }
  0xeb   : > { %v712_v27 = vsub.f32 1.0, %v711_v26 }
  0xec   : > { %vm589_vm4 = vcmp.lt.f32.partialorder %v587_v61, 4.0 }
  0xed   : > { %v593_v2 = vsel %vm589_vm4, %v1583_v15, 0.0  ;;  %v591_v3 = vsel %vm589_vm4, %v1566_v6, 0.0  ;;  %v713_v28 = vmul.f32 %v1073_v25, %v712_v27 }
  0xee   : > { %947 = vmatpush.msk.msra.mxu2 %vm605_vm3, %v593_v2  ;;  %951 = vmatpush.msk.msra.mxu3 %vm605_vm3, %v591_v3 }
  0xef   : > { %v714_v29 = vadd.f32 %v1073_v25, %v713_v28 }
  0xf0   : > { %948 = vmatpush.msk.msra.mxu2 %vm588_vm6, %v1572_v9  ;;  %952 = vmatpush.msk.msra.mxu3 %vm588_vm6, %v1568_v7  ;;  %v1069_v7 = vld [vmem:[%s1689_s6] ss:$0 sm:$0xff] }
  0xf1   : > { %949 = vmatmul.msk.f32.vlgmr.msra.gmra.mxu2 %vm598_vm5, %v596_v4  ;;  %953 = vmatmul.msk.f32.vlgmr.msra.gmra.mxu3 %vm598_vm5, %v594_v5  ;;  %v716_v30 = vsel %vm715_vm8, %v1073_v25, %v714_v29 }
  0xf9   : > { %950 = vmatmul.msk.f32.gmra.mxu2 %vm598_vm5, %v597_v8  ;;  %954 = vmatmul.msk.f32.gmra.mxu3 %vm598_vm5, %v595_v10 }
 0x174   : > { %v626_v12 = vpop.f32.mrf.mxu2  ;;  %v658_v6 = vpop.f32.mrf.mxu3 }
 0x175   : > { %v659_v13 = vadd.f32 %v658_v6, %v626_v12 }
 0x177   : > { %955 = vmatmul.msk.f32.vlgmr.msrb.gmra.mxu0 %vm672_vm7, %v659_v13 }
 0x17c   : > { %v629_v14 = vpop.f32.mrf.mxu2  ;;  %v661_v15 = vpop.f32.mrf.mxu3 }
 0x17d   : > { %v662_v16 = vadd.f32 %v661_v15, %v629_v14 }
 0x17f   : > { %956 = vmatmul.msk.f32.gmra.mxu0 %vm672_vm7, %v662_v16 }
 0x1f4   : > { %v696_v9 = vpop.f32.mrf.mxu0 }
 0x1f5   : > { %v697_v17 = vadd.f32 %v1069_v7, %v696_v9 }
 0x1f7   : > { %v702_v18 = vadd.f32 %v697_v17, %v1558_v1 }
 0x1f9   : > { %v704_v19 = vsel %vm672_vm7, %v702_v18, 0.0 }
 0x1fa   : > { %705 = vadd.xlane.f32.xlu0 %v704_v19 }
 0x1fc   : > { %v699_v20 = vpop.f32.mrf.mxu0 }
 0x1fd   : > { %v700_v21 = vadd.f32 %v1069_v7, %v699_v20 }
 0x1ff   : > { %v703_v22 = vadd.f32 %v700_v21, %v1556_v0 }
 0x201   : > { %v707_v23 = vsel %vm672_vm7, %v703_v22, 0.0 }
 0x202   : > { %708 = vadd.xlane.f32.xlu0 %v707_v23 }
 0x26d   : > { %v706_v1 = vpop.xlane.xlu0 %705 }
 0x26e   : > { %v717_v31 = vmul.f32 %v716_v30, %v706_v1 }
 0x270   : > { %v719_v32 = vsub.f32 %v702_v18, %v717_v31 }
 0x272   : > { %v721_v33 = vmul.f32 %v719_v32, %v719_v32 }
 0x274   : > { %v723_v34 = vsel %vm672_vm7, %v721_v33, 0.0 }
 0x275   : > { %724 = vadd.xlane.f32.xlu1 %v723_v34  ;;  %v709_v0 = vpop.xlane.xlu0 %708 }
 0x276   : > { %v718_v35 = vmul.f32 %v716_v30, %v709_v0 }
 0x278   : > { %v720_v36 = vsub.f32 %v703_v22, %v718_v35 }
 0x27a   : > { %v722_v37 = vmul.f32 %v720_v36, %v720_v36 }
 0x27c   : > { %v726_v38 = vsel %vm672_vm7, %v722_v37, 0.0 }
 0x27d   : > { %727 = vadd.xlane.f32.xlu1 %v726_v38 }
 0x2e8   : > { %v725_v39 = vpop.xlane.xlu1 %724 }
 0x2e9   : > { %v729_v40 = vmul.f32 %v725_v39, %v716_v30 }
 0x2eb   : > { %v731_v41 = vadd.f32 1e-05, %v729_v40 }
 0x2ed   : > { %1074 = vrsqrt.f32 %v731_v41  ;;  %vm739_vm10 = vweird.f32 %v731_v41 }
 0x2f0   : > { %v728_v42 = vpop.xlane.xlu1 %727 }
 0x2f1   : > { %v730_v43 = vmul.f32 %v728_v42, %v716_v30 }
 0x2f3   : > { %v1075_v44 = vpop.eup %1074  ;;  %v732_v45 = vadd.f32 1e-05, %v730_v43 }
 0x2f4   : > { %v734_v46 = vmul.f32 %v1075_v44, %v731_v41  ;;  %vm740_vm9 = vweird.f32 %v1075_v44 }
 0x2f5   : > { %1076 = vrsqrt.f32 %v732_v45  ;;  %vm741_vm11 = vmor %vm739_vm10, %vm740_vm9  ;;  %vm749_vm13 = vweird.f32 %v732_v45 }
 0x2f6   : > { %v735_v47 = vmul.f32 %v1075_v44, %v734_v46 }
 0x2f8   : > { %v736_v48 = vmul.f32 0.5, %v735_v47 }
 0x2fa   : > { %v737_v49 = vsub.f32 1.5, %v736_v48 }
 0x2fb   : > { %v1077_v50 = vpop.eup %1076 }
 0x2fc   : > { %v738_v51 = vmul.f32 %v1075_v44, %v737_v49  ;;  %v744_v52 = vmul.f32 %v1077_v50, %v732_v45  ;;  %vm750_vm12 = vweird.f32 %v1077_v50 }
 0x2fd   : > { %vm751_vm14 = vmor %vm749_vm13, %vm750_vm12 }
 0x2fe   : > { %v742_v54 = vsel %vm741_vm11, %v1075_v44, %v738_v51  ;;  %v745_v55 = vmul.f32 %v1077_v50, %v744_v52 }
 0x2ff   : > { %v753_v57 = vmul.f32 %v742_v54, %v719_v32 }
 0x300   : > { %v746_v58 = vmul.f32 0.5, %v745_v55 }
 0x301   : > { %v759_v59 = vmul.f32 %v1070_v53, %v753_v57 }
 0x302   : > { %v747_v60 = vsub.f32 1.5, %v746_v58 }
 0x303   : > { %v765_v61 = vadd.f32 %v1071_v56, %v759_v59 }
 0x304   : > { %v748_v62 = vmul.f32 %v1077_v50, %v747_v60 }
 0x305   : > { %767 = vst.msk [vmem:[%s435_s21] sm:$0xff] %vm672_vm7, %v765_v61 }
 0x306   : > { %v752_v63 = vsel %vm751_vm14, %v1077_v50, %v748_v62 }
 0x307   : > { %v754_v2 = vmul.f32 %v752_v63, %v720_v36 }
 0x309   : > { %v760_v3 = vmul.f32 %v1070_v53, %v754_v2 }
 0x30b   : > { %v766_v4 = vadd.f32 %v1071_v56, %v760_v3 }
 0x30d   : > { %768 = vst.msk [vmem:[%s435_s21 + $0x8] sm:$0xff] %vm672_vm7, %v766_v4 }
 0x30e   : > { %1285 = shalt.err (!%p1282_p9)
}
 0x30f   : > { %s1347_s27 = smov 128   ;;  %s1348_s29 = smov 8  }
 0x310   : > { %988 = dma.vmem_to_hbm [thread:$0]  (%p1500_p13), %s783_s3, 256, %s785_s16, %s770_s26, %s1347_s27, %s1347_s27, %s1348_s29  }
 0x311 PF: > { %s799_s25 = sand.u32 1, %s1324_s30   ;;  %p1711_p10 = scmp.ge.s32.totalorder %s1336_s12, 2 }
 0x312   : > { %s800_s28 = scalar_lea.sflag [#allocation4], %s799_s25 }
 0x313   : > { %p1011_p11 = pnand %p1711_p10, %p1505_p4 }
 0x315   : > { %p1012_p0 = pneg %p1011_p11 }
 0x317   : > { %1319 = dma.done.wait (%p1012_p0), %s800_s28, 256  }
 0x318   : > { %1321 = vsyncadd (%p1012_p0), %s800_s28, 4294967040  ;;  %p25_p2 = scmp.ge.s32.totalorder %s1480_s18, 4   ;;  %s1712_s30 = smov %s1328_s10 }
 0x319   : > { %s1713_s10 = smov %s1332_s11  ;;  %s1714_s11 = smov %s1492_s20 }
 0x31a   : > { %s1715_s12 = smov %s1480_s18  ;;  %27 = sbr.rel (!%p25_p2) target bundleno = 12 (0xc), region = 121 }
 0x31f   :  { %806 = vsyncpa [#allocation3], 1 }
 0x320   :  { %808 = vsyncpa [#allocation3 + $0x1], 1 }
 0x321   :  { %809 = vsyncpa [#allocation6], 1 }
 0x322   :  { %810 = vsyncpa [#allocation9], 1 }
 0x323   :  { %811 = vsyncpa [#allocation12], 1 }
 0x324   :  { %812 = vsyncpa [#allocation4], 1 }
 0x325   :  { %814 = vsyncpa [#allocation4 + $0x1], 1 }

</bundles_post_ra>
